<compile_context>
chip_gen: v7x
topology: tpu7x:2x2x1
jax: 0.10.0
libtpu: 0.0.40
codegen_flags: <defaults>
</compile_context>

<pallas_src>
import jax
import jax.numpy as jnp
import numpy as np
from jax.experimental import pallas as pl
from jax.experimental.pallas import tpu as pltpu

NEG_SLOPE = 0.01          # f.leaky_relu default
NEG_BIG = -1e30           # mask value baked into the padded class-bias entries
H1, H2 = 256, 128         # hidden widths of conv1 / conv2
C_PAD = 128               # lane-dense padded class dim


def _leaky_relu(x):
    # valid for 0 < slope < 1: max(x, slope*x)
    return jnp.maximum(x, NEG_SLOPE * x)


def _round_up(n, m):
    return ((n + m - 1) // m) * m


# --------------------------------------------------------------------------- kernels

def project_kernel(x_ref, w_ref, b_ref, pa_ref, ps_ref):
    """Row block of p = x @ [W_l | W_r]; aggregation half -> bf16, self half (+bias) -> f32."""
    f_out = w_ref.shape[1] // 2
    p = jnp.dot(x_ref[...], w_ref[...], preferred_element_type=jnp.float32)
    pa_ref[...] = p[:, :f_out].astype(jnp.bfloat16)
    ps_ref[...] = p[:, f_out:] + b_ref[...]


def layer1_aggfirst_kernel(a_ref, x_full_ref, x_blk_ref, w1l_ref, w1r_ref,
                           b1_ref, w2_ref, b2_ref, p2a_ref, p2s_ref):
    """Layer 1 (aggregate-first, F_in <= 256) + layer-2 projection for one row block."""
    # agg = A[rows] @ x  (inner dim F_in)
    agg = jnp.dot(a_ref[...], x_full_ref[...], preferred_element_type=jnp.float32)
    # two MXU dots instead of a concatenated operand
    h = (jnp.dot(agg.astype(jnp.bfloat16), w1l_ref[...],
                 preferred_element_type=jnp.float32)
         + jnp.dot(x_blk_ref[...], w1r_ref[...],
                   preferred_element_type=jnp.float32)
         + b1_ref[...])
    h = _leaky_relu(h)
    # dropout(training=False) == identity
    f_out = w2_ref.shape[1] // 2
    p = jnp.dot(h.astype(jnp.bfloat16), w2_ref[...], preferred_element_type=jnp.float32)
    p2a_ref[...] = p[:, :f_out].astype(jnp.bfloat16)
    p2s_ref[...] = p[:, f_out:] + b2_ref[...]


def aggregate_project_kernel(a_ref, pa_full_ref, ps_blk_ref, w_ref, b_ref,
                             pa_out_ref, ps_out_ref):
    """Finish layer L for one row block (A[rows] @ p_agg + p_self, leaky_relu),
    then emit layer L+1's projection for the same rows."""
    h = (jnp.dot(a_ref[...], pa_full_ref[...], preferred_element_type=jnp.float32)
         + ps_blk_ref[...])
    h = _leaky_relu(h)
    # dropout(training=False) == identity
    f_out = w_ref.shape[1] // 2
    p = jnp.dot(h.astype(jnp.bfloat16), w_ref[...], preferred_element_type=jnp.float32)
    pa_out_ref[...] = p[:, :f_out].astype(jnp.bfloat16)
    ps_out_ref[...] = p[:, f_out:] + b_ref[...]


def final_kernel(a_ref, pa_full_ref, ps_blk_ref, out_ref):
    """Layer-3 aggregation + log_softmax for one row block. Padded class columns are
    already at NEG_BIG via the bias baked into ps (their weight columns are zero)."""
    logits = (jnp.dot(a_ref[...], pa_full_ref[...], preferred_element_type=jnp.float32)
              + ps_blk_ref[...])
    m = jnp.max(logits, axis=1, keepdims=True)
    z = logits - m
    lse = jnp.log(jnp.sum(jnp.exp(z), axis=1, keepdims=True))
    out_ref[...] = z - lse


# --------------------------------------------------------------------------- wrapper

def _vmem_limit_bytes(n_pad, tm, f_in, vmem_cap):
    """Rough per-call footprint: resident bf16 aggregation operand + weights + 2x
    double-buffered row blocks (A tile, bf16/f32 inputs and outputs), plus margin."""
    f_big = max(f_in, H1)
    resident = n_pad * f_big * 2
    weights = (2 * f_in * H1 + H1 * 2 * H2 + H2 * 2 * C_PAD) * 2
    per_step = (tm * n_pad * 2          # A row block (bf16)
                + tm * f_big * 2        # bf16 row-block input
                + tm * 2 * H1 * 4       # f32 self/proj row blocks
                + tm * 2 * H1 * 2)      # bf16 projection outputs
    need = resident + weights + 2 * per_step + (8 << 20)
    return int(min(max(need, 16 << 20), int(vmem_cap * 0.75)))


def graphsage_forward(A, x, params, num_classes):
    (w1l, w1r, b1, w2l, w2r, b2, w3l, w3r, b3) = params
    N, F_in = x.shape
    C = num_classes
    assert C <= C_PAD

    # Generation-adaptive tiling: ~64 MiB VMEM parts (v7x) get TM=256, 128 MiB parts 512.
    try:
        vmem_cap = int(pltpu.get_tpu_info().vmem_capacity_bytes)
    except Exception:
        vmem_cap = 64 << 20
    tm_target = 512 if vmem_cap > (64 << 20) else 256

    TM = min(tm_target, _round_up(N, 8))
    N_pad = _round_up(N, TM)
    G = N_pad // TM

    # Pad graph inputs with zero rows/cols (no effect on real rows) and cast to bf16.
    A_bf = jnp.pad(A, ((0, N_pad - N), (0, N_pad - N))).astype(jnp.bfloat16)
    x_bf = jnp.pad(x, ((0, N_pad - N), (0, 0))).astype(jnp.bfloat16)

    # Weight prep: bf16 MXU feeds, f32 biases. Layer-1 ordering chosen by F_in vs H1.
    project_first_l1 = F_in > H1
    if project_first_l1:
        w1 = jnp.concatenate([w1l, w1r], axis=1).astype(jnp.bfloat16)       # [F_in, 2*H1]
    else:
        w1l_b = w1l.astype(jnp.bfloat16)                                    # [F_in, H1]
        w1r_b = w1r.astype(jnp.bfloat16)                                    # [F_in, H1]
    w2 = jnp.concatenate([w2l, w2r], axis=1).astype(jnp.bfloat16)           # [H1, 2*H2]
    pad_c = C_PAD - C
    w3 = jnp.concatenate([jnp.pad(w3l, ((0, 0), (0, pad_c))),
                          jnp.pad(w3r, ((0, 0), (0, pad_c)))],
                         axis=1).astype(jnp.bfloat16)                        # [H2, 2*C_PAD]
    # Bake the class-padding mask into the bias (padded weight columns are zero).
    b3_p = jnp.concatenate([b3, jnp.full((1, pad_c), NEG_BIG, b3.dtype)], axis=1)

    vmem_limit = _vmem_limit_bytes(N_pad, TM, F_in, vmem_cap)
    cparams = pltpu.CompilerParams(dimension_semantics=("parallel",),
                                   vmem_limit_bytes=vmem_limit)

    def row(cols):
        return pl.BlockSpec((TM, cols), lambda i: (i, 0))

    def full(arr):
        return pl.BlockSpec(arr.shape, lambda i: (0, 0))

    def out_pair(f_out):
        return (jax.ShapeDtypeStruct((N_pad, f_out), jnp.bfloat16),
                jax.ShapeDtypeStruct((N_pad, f_out), jnp.float32))

    # ---- layer 1 (+ layer-2 projection) ----
    if project_first_l1:
        # p1 = x @ [W1_l | W1_r]  (row-tiled, trivially parallel)
        p1a, p1s = pl.pallas_call(
            project_kernel,
            grid=(G,),
            in_specs=[row(F_in), full(w1), full(b1)],
            out_specs=(row(H1), row(H1)),
            out_shape=out_pair(H1),
            compiler_params=cparams,
        )(x_bf, w1, b1)
        # h1 = leaky(A @ p1_agg + p1_self); emit layer-2 projection
        p2a, p2s = pl.pallas_call(
            aggregate_project_kernel,
            grid=(G,),
            in_specs=[row(N_pad), full(p1a), row(H1), full(w2), full(b2)],
            out_specs=(row(H2), row(H2)),
            out_shape=out_pair(H2),
            compiler_params=cparams,
        )(A_bf, p1a, p1s, w2, b2)
    else:
        # aggregate-first layer 1 fused with layer-2 projection
        p2a, p2s = pl.pallas_call(
            layer1_aggfirst_kernel,
            grid=(G,),
            in_specs=[row(N_pad), full(x_bf), row(F_in), full(w1l_b), full(w1r_b),
                      full(b1), full(w2), full(b2)],
            out_specs=(row(H2), row(H2)),
            out_shape=out_pair(H2),
            compiler_params=cparams,
        )(A_bf, x_bf, x_bf, w1l_b, w1r_b, b1, w2, b2)

    # ---- layer 2 aggregation + layer-3 projection ----
    p3a, p3s = pl.pallas_call(
        aggregate_project_kernel,
        grid=(G,),
        in_specs=[row(N_pad), full(p2a), row(H2), full(w3), full(b3_p)],
        out_specs=(row(C_PAD), row(C_PAD)),
        out_shape=out_pair(C_PAD),
        compiler_params=cparams,
    )(A_bf, p2a, p2s, w3, b3_p)

    # ---- layer 3 aggregation + log_softmax ----
    out = pl.pallas_call(
        final_kernel,
        grid=(G,),
        in_specs=[row(N_pad), full(p3a), row(C_PAD)],
        out_specs=row(C_PAD),
        out_shape=jax.ShapeDtypeStruct((N_pad, C_PAD), jnp.float32),
        compiler_params=cparams,
    )(A_bf, p3a, p3s)

    return out[:N, :C]


# --------------------------------------------------------------------------- graph / params

def build_adjacency(edge_index, num_nodes):
    """Dense row-normalized adjacency: A @ X == mean over incoming neighbors."""
    src = edge_index[0]
    dst = edge_index[1]
    A = jnp.zeros((num_nodes, num_nodes), jnp.float32).at[dst, src].add(1.0)
    deg = jnp.zeros((num_nodes,), jnp.float32).at[dst].add(1.0)
    return A / jnp.maximum(deg, 1.0)[:, None]


def init_params(key, num_features, num_classes):
    dims = [(num_features, H1), (H1, H2), (H2, num_classes)]
    params = []
    for (fi, fo) in dims:
        key, k1, k2, k3 = jax.random.split(key, 4)
        scale = 1.0 / np.sqrt(fi)
        wl = jax.random.uniform(k1, (fi, fo), jnp.float32, -scale, scale)  # lin_l weight
        wr = jax.random.uniform(k2, (fi, fo), jnp.float32, -scale, scale)  # lin_r weight (no bias)
        b = jax.random.uniform(k3, (1, fo), jnp.float32, -scale, scale)    # lin_l bias
        params += [wl, wr, b]
    return tuple(params)


def reference_forward(A, x, params, num_classes):
    """Pure-JAX f32 reference (same math, no bf16)."""
    (w1l, w1r, b1, w2l, w2r, b2, w3l, w3r, b3) = params
    h = jnp.maximum(A @ x @ w1l + x @ w1r + b1,
                    NEG_SLOPE * (A @ x @ w1l + x @ w1r + b1))
    h = jnp.maximum(A @ h @ w2l + h @ w2r + b2,
                    NEG_SLOPE * (A @ h @ w2l + h @ w2r + b2))
    logits = A @ h @ w3l + h @ w3r + b3
    return jax.nn.log_softmax(logits, axis=1)


if __name__ == "__main__":
    num_nodes = 16
    num_features = 32
    num_classes = 8
    num_edges = 48

    key = jax.random.PRNGKey(0)
    kx, ke_src, ke_dst, kp = jax.random.split(key, 4)

    x = jax.random.normal(kx, (num_nodes, num_features), jnp.float32)
    edge_index = jnp.stack([
        jax.random.randint(ke_src, (num_edges,), 0, num_nodes),
        jax.random.randint(ke_dst, (num_edges,), 0, num_nodes),
    ], axis=0)  # [2, E]

    A = build_adjacency(edge_index, num_nodes)
    params = init_params(kp, num_features, num_classes)

    out = graphsage_forward(A, x, params, num_classes)
    jax.block_until_ready(out)

    ref = reference_forward(A, x, params, num_classes)
    assert out.shape == (num_nodes, num_classes)
    assert bool(jnp.all(jnp.isfinite(out)))
    max_err = float(jnp.max(jnp.abs(out - ref)))
    assert max_err < 0.25, f"max abs error vs f32 reference too large: {max_err}"
    print("KERNEL_OK")
</pallas_src>

<mosaic_0001>
module attributes {stable_mosaic.version = 11 : i64} {
  func.func @layer1_aggfirst_kernel(%arg0: i32, %arg1: memref<16x16xbf16, #tpu.memory_space<vmem>>, %arg2: memref<16x32xbf16, #tpu.memory_space<vmem>>, %arg3: memref<16x32xbf16, #tpu.memory_space<vmem>>, %arg4: memref<32x256xbf16, #tpu.memory_space<vmem>>, %arg5: memref<32x256xbf16, #tpu.memory_space<vmem>>, %arg6: memref<1x256xf32, #tpu.memory_space<vmem>>, %arg7: memref<256x256xbf16, #tpu.memory_space<vmem>>, %arg8: memref<1x128xf32, #tpu.memory_space<vmem>>, %arg9: memref<16x128xbf16, #tpu.memory_space<vmem>>, %arg10: memref<16x128xf32, #tpu.memory_space<vmem>>) attributes {dimension_semantics = [#tpu.dimension_semantics<parallel>], iteration_bounds = array<i64: 1>, scalar_prefetch = 0 : i64, scratch_operands = 0 : i64, tpu.core_type = #tpu.core_type<tc>, window_params = [{transform_indices = @transform_0, window_bounds = array<i64: 16, 16>}, {pipeline_mode = #tpu.pipeline_mode<synchronous>, transform_indices = @transform_1, window_bounds = array<i64: 16, 32>}, {transform_indices = @transform_2, window_bounds = array<i64: 16, 32>}, {pipeline_mode = #tpu.pipeline_mode<synchronous>, transform_indices = @transform_3, window_bounds = array<i64: 32, 256>}, {pipeline_mode = #tpu.pipeline_mode<synchronous>, transform_indices = @transform_4, window_bounds = array<i64: 32, 256>}, {pipeline_mode = #tpu.pipeline_mode<synchronous>, transform_indices = @transform_5, window_bounds = array<i64: 1, 256>}, {pipeline_mode = #tpu.pipeline_mode<synchronous>, transform_indices = @transform_6, window_bounds = array<i64: 256, 256>}, {pipeline_mode = #tpu.pipeline_mode<synchronous>, transform_indices = @transform_7, window_bounds = array<i64: 1, 128>}, {transform_indices = @transform_8, window_bounds = array<i64: 16, 128>}, {transform_indices = @transform_9, window_bounds = array<i64: 16, 128>}]} {
    %c0 = arith.constant 0 : index
    %c0_0 = arith.constant 0 : index
    %0 = vector.load %arg1[%c0, %c0_0] : memref<16x16xbf16, #tpu.memory_space<vmem>>, vector<16x16xbf16>
    %c0_1 = arith.constant 0 : index
    %c0_2 = arith.constant 0 : index
    %1 = vector.load %arg2[%c0_1, %c0_2] : memref<16x32xbf16, #tpu.memory_space<vmem>>, vector<16x32xbf16>
    %cst = arith.constant dense<0.000000e+00> : vector<16x32xf32>
    %2 = tpu.matmul %0, %1, %cst {dimension_numbers = #tpu.dot_dimension_numbers<[1], [0], [0], [1], [0, 0, 1, 1], [], []>} : vector<16x16xbf16>, vector<16x32xbf16>, vector<16x32xf32> -> vector<16x32xf32>
    %3 = arith.truncf %2 : vector<16x32xf32> to vector<16x32xbf16>
    %c0_3 = arith.constant 0 : index
    %c0_4 = arith.constant 0 : index
    %4 = vector.load %arg4[%c0_3, %c0_4] : memref<32x256xbf16, #tpu.memory_space<vmem>>, vector<32x256xbf16>
    %cst_5 = arith.constant dense<0.000000e+00> : vector<16x256xf32>
    %5 = tpu.matmul %3, %4, %cst_5 {dimension_numbers = #tpu.dot_dimension_numbers<[1], [0], [0], [1], [0, 0, 1, 1], [], []>} : vector<16x32xbf16>, vector<32x256xbf16>, vector<16x256xf32> -> vector<16x256xf32>
    %c0_6 = arith.constant 0 : index
    %c0_7 = arith.constant 0 : index
    %6 = vector.load %arg3[%c0_6, %c0_7] : memref<16x32xbf16, #tpu.memory_space<vmem>>, vector<16x32xbf16>
    %c0_8 = arith.constant 0 : index
    %c0_9 = arith.constant 0 : index
    %7 = vector.load %arg5[%c0_8, %c0_9] : memref<32x256xbf16, #tpu.memory_space<vmem>>, vector<32x256xbf16>
    %cst_10 = arith.constant dense<0.000000e+00> : vector<16x256xf32>
    %8 = tpu.matmul %6, %7, %cst_10 {dimension_numbers = #tpu.dot_dimension_numbers<[1], [0], [0], [1], [0, 0, 1, 1], [], []>} : vector<16x32xbf16>, vector<32x256xbf16>, vector<16x256xf32> -> vector<16x256xf32>
    %9 = arith.addf %5, %8 : vector<16x256xf32>
    %c0_11 = arith.constant 0 : index
    %c0_12 = arith.constant 0 : index
    %10 = vector.load %arg6[%c0_11, %c0_12] : memref<1x256xf32, #tpu.memory_space<vmem>>, vector<1x256xf32>
    %11 = vector.broadcast %10 : vector<1x256xf32> to vector<16x256xf32>
    %12 = arith.addf %9, %11 : vector<16x256xf32>
    %cst_13 = arith.constant 0.00999999977 : f32
    %13 = vector.broadcast %cst_13 : f32 to vector<16x256xf32>
    %14 = arith.mulf %13, %12 : vector<16x256xf32>
    %15 = arith.maximumf %12, %14 : vector<16x256xf32>
    %16 = arith.truncf %15 : vector<16x256xf32> to vector<16x256xbf16>
    %c0_14 = arith.constant 0 : index
    %c0_15 = arith.constant 0 : index
    %17 = vector.load %arg7[%c0_14, %c0_15] : memref<256x256xbf16, #tpu.memory_space<vmem>>, vector<256x256xbf16>
    %cst_16 = arith.constant dense<0.000000e+00> : vector<16x256xf32>
    %18 = tpu.matmul %16, %17, %cst_16 {dimension_numbers = #tpu.dot_dimension_numbers<[1], [0], [0], [1], [0, 0, 1, 1], [], []>} : vector<16x256xbf16>, vector<256x256xbf16>, vector<16x256xf32> -> vector<16x256xf32>
    %19 = vector.extract_strided_slice %18 {offsets = [0, 0], sizes = [16, 128], strides = [1, 1]} : vector<16x256xf32> to vector<16x128xf32>
    %20 = arith.truncf %19 : vector<16x128xf32> to vector<16x128xbf16>
    %c0_17 = arith.constant 0 : index
    %c0_18 = arith.constant 0 : index
    %21 = vector.load %arg9[%c0_17, %c0_18] : memref<16x128xbf16, #tpu.memory_space<vmem>>, vector<16x128xbf16>
    tpu.vector_store %arg9[%c0_17, %c0_18], %20 {strides = array<i32>} : memref<16x128xbf16, #tpu.memory_space<vmem>>, vector<16x128xbf16>,
    %22 = vector.extract_strided_slice %18 {offsets = [0, 128], sizes = [16, 128], strides = [1, 1]} : vector<16x256xf32> to vector<16x128xf32>
    %c0_19 = arith.constant 0 : index
    %c0_20 = arith.constant 0 : index
    %23 = vector.load %arg8[%c0_19, %c0_20] : memref<1x128xf32, #tpu.memory_space<vmem>>, vector<1x128xf32>
    %24 = vector.broadcast %23 : vector<1x128xf32> to vector<16x128xf32>
    %25 = arith.addf %22, %24 : vector<16x128xf32>
    %c0_21 = arith.constant 0 : index
    %c0_22 = arith.constant 0 : index
    %26 = vector.load %arg10[%c0_21, %c0_22] : memref<16x128xf32, #tpu.memory_space<vmem>>, vector<16x128xf32>
    tpu.vector_store %arg10[%c0_21, %c0_22], %25 {strides = array<i32>} : memref<16x128xf32, #tpu.memory_space<vmem>>, vector<16x128xf32>,
    return
  }
  func.func @transform_0(%arg0: i32) -> (i32, i32) {
    %c0_i32 = arith.constant 0 : i32
    %c0_i32_0 = arith.constant 0 : i32
    return %arg0, %c0_i32 : i32, i32
  }
  func.func @transform_1(%arg0: i32) -> (i32, i32) {
    %c0_i32 = arith.constant 0 : i32
    %c0_i32_0 = arith.constant 0 : i32
    %c0_i32_1 = arith.constant 0 : i32
    return %c0_i32, %c0_i32_0 : i32, i32
  }
  func.func @transform_2(%arg0: i32) -> (i32, i32) {
    %c0_i32 = arith.constant 0 : i32
    %c0_i32_0 = arith.constant 0 : i32
    return %arg0, %c0_i32 : i32, i32
  }
  func.func @transform_3(%arg0: i32) -> (i32, i32) {
    %c0_i32 = arith.constant 0 : i32
    %c0_i32_0 = arith.constant 0 : i32
    %c0_i32_1 = arith.constant 0 : i32
    return %c0_i32, %c0_i32_0 : i32, i32
  }
  func.func @transform_4(%arg0: i32) -> (i32, i32) {
    %c0_i32 = arith.constant 0 : i32
    %c0_i32_0 = arith.constant 0 : i32
    %c0_i32_1 = arith.constant 0 : i32
    return %c0_i32, %c0_i32_0 : i32, i32
  }
  func.func @transform_5(%arg0: i32) -> (i32, i32) {
    %c0_i32 = arith.constant 0 : i32
    %c0_i32_0 = arith.constant 0 : i32
    %c0_i32_1 = arith.constant 0 : i32
    return %c0_i32, %c0_i32_0 : i32, i32
  }
  func.func @transform_6(%arg0: i32) -> (i32, i32) {
    %c0_i32 = arith.constant 0 : i32
    %c0_i32_0 = arith.constant 0 : i32
    %c0_i32_1 = arith.constant 0 : i32
    return %c0_i32, %c0_i32_0 : i32, i32
  }
  func.func @transform_7(%arg0: i32) -> (i32, i32) {
    %c0_i32 = arith.constant 0 : i32
    %c0_i32_0 = arith.constant 0 : i32
    %c0_i32_1 = arith.constant 0 : i32
    return %c0_i32, %c0_i32_0 : i32, i32
  }
  func.func @transform_8(%arg0: i32) -> (i32, i32) {
    %c0_i32 = arith.constant 0 : i32
    %c0_i32_0 = arith.constant 0 : i32
    return %arg0, %c0_i32 : i32, i32
  }
  func.func @transform_9(%arg0: i32) -> (i32, i32) {
    %c0_i32 = arith.constant 0 : i32
    %c0_i32_0 = arith.constant 0 : i32
    return %arg0, %c0_i32 : i32, i32
  }
}

</mosaic_0001>

<bundles_post_ra>
// kernel: tpu_custom_call.1
= control target key start
LH: loop header
LB: loop body
LE: loop exit
PB: predicated region body
PF: predicated region fallthrough
CT: control target
= control target key end

     0   :  { %15 = vsyncpa [#allocation3], 0  ;;  %s1198_s0 = inlined_call_operand.hbm [shape: bf16[16,16], index: 0, kind: input, shape index: {}]   ;;  %s1199_s1 = inlined_call_operand.hbm [shape: bf16[16,32], index: 1, kind: input, shape index: {}]   ;;  %s1200_s2 = inlined_call_operand.hbm [shape: bf16[16,32], index: 2, kind: input, shape index: {}]   ;;  %s1201_s3 = inlined_call_operand.hbm [shape: bf16[32,256], index: 3, kind: input, shape index: {}]   ;;  %s1202_s4 = inlined_call_operand.hbm [shape: bf16[32,256], index: 4, kind: input, shape index: {}]   ;;  %s1203_s5 = inlined_call_operand.vmem [shape: f32[1,256], index: 5, kind: input, shape index: {}]   ;;  %s1204_s6 = inlined_call_operand.hbm [shape: bf16[256,256], index: 6, kind: input, shape index: {}]   ;;  %s1205_s7 = inlined_call_operand.vmem [shape: f32[1,128], index: 7, kind: input, shape index: {}]   ;;  %s1206_s8 = inlined_call_operand.hbm [shape: bf16[16,128], index: 8, kind: output, shape index: {0}]   ;;  %s1207_s9 = inlined_call_operand.hbm [shape: f32[16,128], index: 9, kind: output, shape index: {1}]  }
   0x1   :  { %16 = vsyncpa [#allocation6], 0 }
   0x2   :  { %17 = vsyncpa [#allocation9], 0 }
   0x3   :  { %18 = vsyncpa [#allocation12], 0 }
   0x4   :  { %19 = vsyncpa [#allocation4], 0 }
   0x5   :  { %20 = vsyncpa [#allocation15], 0  ;;  %s977_s30 = smov [#allocation5]   ;;  %s978_s11 = smov [#allocation8]  }
   0x6   :  { %s38_s10 = sshll.u32 %s977_s30, 4  ;;  %s62_s12 = sshll.u32 %s978_s11, 4  ;;  %s39_s10 = int_to_ptr.vmem [resolvable:$true] %s38_s10  ;;  %s1042_s12 = int_to_ptr.vmem [resolvable:$true] %s62_s12 }
   0x7   :  { %s789_s15 = scalar_lea.hbm %s1199_s1, 128 }
   0x8   :  { %p790_p0 = scmp.ne.s32.totalorder %s1199_s1, %s789_s15  ;;  %p793_p1 = scmp.lt.u32.totalorder %s789_s15, %s1199_s1 }
   0xa   :  { %p795_p2 = pnand %p793_p1, %p790_p0 }
   0xc   :  { %798 = shalt.err (!%p795_p2)
}
   0xd   :  { %s799_s20 = scalar_lea.vmem %s39_s10, 128  ;;  %p804_p4 = scmp.lt.s32.totalorder %s39_s10, %s39_s10 }
   0xe   :  { %p800_p3 = scmp.ne.s32.totalorder %s39_s10, %s799_s20  ;;  %p805_p5 = scmp.lt.s32.totalorder %s799_s20, %s799_s20 }
  0x10   :  { %p806_p6 = por %p805_p5, %p804_p4 }
  0x12   :  { %p807_p7 = pnand %p806_p6, %p800_p3 }
  0x14   :  { %810 = shalt.err (!%p807_p7)
}
  0x15   :  { %s979_s21 = smov 64   ;;  %s980_s22 = smov 4  }
  0x16   :  { %44 = dma.hbm_to_vmem [thread:$0]  %s1199_s1, 128, %s39_s10, [#allocation6], %s979_s21, %s979_s21, %s980_s22  }
  0x17   :  { %s811_s27 = scalar_lea.hbm %s1201_s3, 512 }
  0x18   :  { %p812_p8 = scmp.ne.s32.totalorder %s1201_s3, %s811_s27  ;;  %p815_p9 = scmp.lt.u32.totalorder %s811_s27, %s1201_s3 }
  0x1a   :  { %p817_p10 = pnand %p815_p9, %p812_p8 }
  0x1c   :  { %820 = shalt.err (!%p817_p10)
}
  0x1d   :  { %s821_s13 = scalar_lea.vmem %s1042_s12, 512  ;;  %p826_p12 = scmp.lt.s32.totalorder %s1042_s12, %s1042_s12 }
  0x1e   :  { %p822_p11 = scmp.ne.s32.totalorder %s1042_s12, %s821_s13  ;;  %p827_p13 = scmp.lt.s32.totalorder %s821_s13, %s821_s13 }
  0x20   :  { %p828_p0 = por %p827_p13, %p826_p12 }
  0x22   :  { %p829_p1 = pnand %p828_p0, %p822_p11 }
  0x24   :  { %832 = shalt.err (!%p829_p1)
}
  0x25   :  { %s981_s1 = smov 128   ;;  %s982_s10 = smov 8  }
  0x26   :  { %68 = dma.hbm_to_vmem [thread:$0]  %s1201_s3, 512, %s1042_s12, [#allocation9], %s981_s1, %s981_s1, %s982_s10  }
  0x27   :  { %s983_s16 = smov [#allocation2]   ;;  %s984_s18 = smov [#allocation7]  }
  0x28   :  { %s26_s17 = sshll.u32 %s983_s16, 4  ;;  %s50_s19 = sshll.u32 %s984_s18, 4  ;;  %s27_s17 = int_to_ptr.vmem [resolvable:$true] %s26_s17  ;;  %s1079_s19 = int_to_ptr.vmem [resolvable:$true] %s50_s19 }
  0x29   :  { %s833_s24 = scalar_lea.hbm %s1198_s0, 128 }
  0x2a   :  { %p834_p2 = scmp.ne.s32.totalorder %s1198_s0, %s833_s24  ;;  %p837_p3 = scmp.lt.u32.totalorder %s833_s24, %s1198_s0 }
  0x2c   :  { %p839_p4 = pnand %p837_p3, %p834_p2 }
  0x2e   :  { %842 = shalt.err (!%p839_p4)
}
  0x2f   :  { %s843_s3 = scalar_lea.vmem %s27_s17, 128  ;;  %p848_p6 = scmp.lt.s32.totalorder %s27_s17, %s27_s17 }
  0x30   :  { %p844_p5 = scmp.ne.s32.totalorder %s27_s17, %s843_s3  ;;  %p849_p7 = scmp.lt.s32.totalorder %s843_s3, %s843_s3 }
  0x32   :  { %p850_p8 = por %p849_p7, %p848_p6 }
  0x34   :  { %p851_p9 = pnand %p850_p8, %p844_p5 }
  0x36   :  { %854 = shalt.err (!%p851_p9)
}
  0x37   :  { %32 = dma.hbm_to_vmem [thread:$0]  %s1198_s0, 128, %s27_s17, [#allocation3], %s979_s21, %s979_s21, %s980_s22  }
  0x38   :  { %s855_s13 = scalar_lea.hbm %s1200_s2, 128 }
  0x39   :  { %p856_p10 = scmp.ne.s32.totalorder %s1200_s2, %s855_s13  ;;  %p859_p11 = scmp.lt.u32.totalorder %s855_s13, %s1200_s2 }
  0x3b   :  { %p861_p12 = pnand %p859_p11, %p856_p10 }
  0x3d   :  { %864 = shalt.err (!%p861_p12)
}
  0x3e   :  { %s865_s20 = scalar_lea.vmem %s1079_s19, 128  ;;  %p870_p0 = scmp.lt.s32.totalorder %s1079_s19, %s1079_s19 }
  0x3f   :  { %p866_p13 = scmp.ne.s32.totalorder %s1079_s19, %s865_s20  ;;  %p871_p1 = scmp.lt.s32.totalorder %s865_s20, %s865_s20 }
  0x41   :  { %p872_p2 = por %p871_p1, %p870_p0 }
  0x43   :  { %p873_p3 = pnand %p872_p2, %p866_p13 }
  0x45   :  { %876 = shalt.err (!%p873_p3)
}
  0x46   :  { %56 = dma.hbm_to_vmem [thread:$0]  %s1200_s2, 128, %s1079_s19, [#allocation6], %s979_s21, %s979_s21, %s980_s22  }
  0x47   :  { %s985_s23 = smov [#allocation10]   ;;  %s986_s25 = smov [#allocation11]  }
  0x48   :  { %s74_s24 = sshll.u32 %s985_s23, 4  ;;  %s88_s26 = sshll.u32 %s986_s25, 4  ;;  %s75_s24 = int_to_ptr.vmem [resolvable:$true] %s74_s24  ;;  %s1116_s26 = int_to_ptr.vmem [resolvable:$true] %s88_s26 }
  0x49   :  { %s877_s3 = scalar_lea.hbm %s1202_s4, 512 }
  0x4a   :  { %p878_p4 = scmp.ne.s32.totalorder %s1202_s4, %s877_s3  ;;  %p881_p5 = scmp.lt.u32.totalorder %s877_s3, %s1202_s4 }
  0x4c   :  { %p883_p6 = pnand %p881_p5, %p878_p4 }
  0x4e   :  { %886 = shalt.err (!%p883_p6)
}
  0x4f   :  { %s887_s2 = scalar_lea.vmem %s75_s24, 512  ;;  %p892_p8 = scmp.lt.s32.totalorder %s75_s24, %s75_s24 }
  0x50   :  { %p888_p7 = scmp.ne.s32.totalorder %s75_s24, %s887_s2  ;;  %p893_p9 = scmp.lt.s32.totalorder %s887_s2, %s887_s2 }
  0x52   :  { %p894_p10 = por %p893_p9, %p892_p8 }
  0x54   :  { %p895_p11 = pnand %p894_p10, %p888_p7 }
  0x56   :  { %898 = shalt.err (!%p895_p11)
}
  0x57   :  { %80 = dma.hbm_to_vmem [thread:$0]  %s1202_s4, 512, %s75_s24, [#allocation9], %s981_s1, %s981_s1, %s982_s10  }
  0x58   :  { %s899_s16 = scalar_lea.hbm %s1204_s6, 4096 }
  0x59   :  { %p900_p12 = scmp.ne.s32.totalorder %s1204_s6, %s899_s16  ;;  %p903_p13 = scmp.lt.u32.totalorder %s899_s16, %s1204_s6 }
  0x5b   :  { %p905_p0 = pnand %p903_p13, %p900_p12 }
  0x5d   :  { %908 = shalt.err (!%p905_p0)
}
  0x5e   :  { %s909_s23 = scalar_lea.vmem %s1116_s26, 4096  ;;  %p914_p2 = scmp.lt.s32.totalorder %s1116_s26, %s1116_s26 }
  0x5f   :  { %p910_p1 = scmp.ne.s32.totalorder %s1116_s26, %s909_s23  ;;  %p915_p3 = scmp.lt.s32.totalorder %s909_s23, %s909_s23 }
  0x61   :  { %p916_p4 = por %p915_p3, %p914_p2 }
  0x63   :  { %p917_p5 = pnand %p916_p4, %p910_p1 }
  0x65   :  { %920 = shalt.err (!%p917_p5)
}
  0x66   :  { %94 = dma.hbm_to_vmem [thread:$0]  %s1204_s6, 4096, %s1116_s26, [#allocation12], %s981_s1, %s981_s1, %s982_s10  }
  0x67   :  { %965 = dma.done.wait [#allocation3], 128  }
  0x68   :  { %966 = vsyncadd [#allocation3], 4294967168 }
  0x69   :  { %967 = dma.done.wait [#allocation6], 256  }
  0x6a   :  { %968 = vsyncadd [#allocation6], 4294967040 }
  0x6b   :  { %969 = dma.done.wait [#allocation9], 1024  }
  0x6c   :  { %970 = vsyncadd [#allocation9], 4294966272 }
  0x6d   :  { %971 = dma.done.wait [#allocation12], 4096  }
  0x6e   :  { %972 = vsyncadd [#allocation12], 4294963200  ;;  %v987_v0 = vmov 0.0   ;;  %vm988_vm0 = vmmov 0   ;;  %v726_v1 = vld [vmem:[#allocation5] sm:$0xff]   ;;  %v727_v2 = vld [vmem:[#allocation2] sm:$0xff]   ;;  %v327_v50 = vlaneseq }
  0x6f   :  { %701 = vmatprep.subr.bf16.mxu1 %v987_v0  ;;  %703 = vmatprep.mubr.msk.bf16.mxu1 %vm988_vm0, %v987_v0  ;;  %vm131_vm1 = vcmask 130048   ;;  %v728_v3 = vld [vmem:[#allocation10] ss:$8 sps:$4 sm:$0xff]   ;;  %v730_v4 = vld [vmem:[#allocation10 + $0x4] ss:$8 sps:$4 sm:$0xff]   ;;  %v989_v7 = vmov 0  }
  0x70   :  { %702 = vmatpush3.bf16.msra.mxu1 %v726_v1  ;;  %v733_v5 = vld [vmem:[#allocation10 + $0x14] ss:$8 sps:$4 sm:$0xff]   ;;  %v731_v6 = vld [vmem:[#allocation10 + $0x10] ss:$8 sps:$4 sm:$0xff]   ;;  %v736_v8 = vld [vmem:[#allocation8 + $0x4] ss:$8 sps:$4 sm:$0xff]  }
  0x71   :  { %216 = vmatprep.subr.bf16.mxu1 %v730_v4  ;;  %v734_v9 = vld [vmem:[#allocation8] ss:$8 sps:$4 sm:$0xff]   ;;  %v737_v10 = vld [vmem:[#allocation7] sm:$0xff]   ;;  %vm212_vm2 = vcmask 261120   ;;  %v741_v13 = vld [vmem:[#allocation11 + $0x4] ss:$8 sps:$4 sm:$0xff]  }
  0x72   :  { %v740_v11 = vld [vmem:[#allocation8 + $0x14] ss:$8 sps:$4 sm:$0xff]   ;;  %v738_v12 = vld [vmem:[#allocation8 + $0x10] ss:$8 sps:$4 sm:$0xff]   ;;  %v743_v14 = vld [vmem:[#allocation11] ss:$8 sps:$4 sm:$0xff]   ;;  %543 = vmatprep.subr.bf16.mxu0 %v741_v13 }
  0x73   :  { %704 = vmatmul.mubr.msk.bf16.vlgmr.msra.gmra.mrb[0].mxu1 %vm131_vm1, %v727_v2  ;;  %v744_v15 = vld [vmem:[#allocation11 + $0x14] ss:$8 sps:$4 sm:$0xff]   ;;  %544 = vmatpush1.bf16.msra.mxu0 %v743_v14  ;;  %v746_v16 = vld [vmem:[#allocation11 + $0x10] ss:$8 sps:$4 sm:$0xff]   ;;  %v747_v17 = vld [vmem:[#allocation11 + $0x24] ss:$8 sps:$4 sm:$0xff]  }
  0x74   :  { %217 = vmatpush1.bf16.msra.mxu1 %v728_v3  ;;  %248 = vmatprep.mubr.bf16.mxu1 %v989_v7  ;;  %v749_v18 = vld [vmem:[#allocation11 + $0x20] ss:$8 sps:$4 sm:$0xff]   ;;  %v750_v19 = vld [vmem:[#allocation11 + $0x34] ss:$8 sps:$4 sm:$0xff]   ;;  %v752_v20 = vld [vmem:[#allocation11 + $0x30] ss:$8 sps:$4 sm:$0xff]  }
  0x75   :  { %218 = vmatprep.subr.bf16.mxu1 %v733_v5  ;;  %545 = vmatprep.subr.bf16.mxu0 %v744_v15  ;;  %v753_v21 = vld [vmem:[#allocation11 + $0x44] ss:$8 sps:$4 sm:$0xff]   ;;  %v755_v22 = vld [vmem:[#allocation11 + $0x40] ss:$8 sps:$4 sm:$0xff]   ;;  %v756_v23 = vld [vmem:[#allocation11 + $0x54] ss:$8 sps:$4 sm:$0xff]  }
  0x76   :  { %v758_v24 = vld [vmem:[#allocation11 + $0x50] ss:$8 sps:$4 sm:$0xff]   ;;  %v759_v25 = vld [vmem:[#allocation11 + $0x64] ss:$8 sps:$4 sm:$0xff]   ;;  %v761_v26 = vld [vmem:[#allocation11 + $0x60] ss:$8 sps:$4 sm:$0xff]  }
  0x77   :  { %546 = vmatpush1.bf16.msra.mxu0 %v746_v16  ;;  %v762_v27 = vld [vmem:[#allocation11 + $0x74] ss:$8 sps:$4 sm:$0xff]   ;;  %v764_v28 = vld [vmem:[#allocation11 + $0x70] ss:$8 sps:$4 sm:$0xff]   ;;  %v765_v29 = vld [vmem:[#allocation11 + $0x84] ss:$8 sps:$4 sm:$0xff]  }
  0x78   :  { %219 = vmatpush1.bf16.msra.mxu1 %v731_v6  ;;  %547 = vmatprep.subr.bf16.mxu0 %v747_v17  ;;  %v767_v30 = vld [vmem:[#allocation11 + $0x80] ss:$8 sps:$4 sm:$0xff]   ;;  %v768_v31 = vld [vmem:[#allocation11 + $0x94] ss:$8 sps:$4 sm:$0xff]   ;;  %v770_v32 = vld [vmem:[#allocation11 + $0x90] ss:$8 sps:$4 sm:$0xff]  }
  0x79   :  { %282 = vmatprep.subr.bf16.mxu1 %v736_v8  ;;  %v771_v33 = vld [vmem:[#allocation11 + $0xa4] ss:$8 sps:$4 sm:$0xff]   ;;  %v773_v34 = vld [vmem:[#allocation11 + $0xa0] ss:$8 sps:$4 sm:$0xff]   ;;  %v774_v35 = vld [vmem:[#allocation11 + $0xb4] ss:$8 sps:$4 sm:$0xff]  }
  0x7a   :  { %v776_v36 = vld [vmem:[#allocation11 + $0xb0] ss:$8 sps:$4 sm:$0xff]   ;;  %v777_v37 = vld [vmem:[#allocation11 + $0xc4] ss:$8 sps:$4 sm:$0xff]   ;;  %v779_v38 = vld [vmem:[#allocation11 + $0xc0] ss:$8 sps:$4 sm:$0xff]  }
  0x7b   :  { %651 = vmatmul.mubr.msk.bf16.vlgmr.msra.gmra.mrb[4].mxu1 %vm212_vm2, %v737_v10  ;;  %548 = vmatpush1.bf16.msra.mxu0 %v749_v18  ;;  %v780_v44 = vld [vmem:[#allocation11 + $0xd4] ss:$8 sps:$4 sm:$0xff]   ;;  %v782_v45 = vld [vmem:[#allocation11 + $0xd0] ss:$8 sps:$4 sm:$0xff]   ;;  %v783_v46 = vld [vmem:[#allocation11 + $0xe4] ss:$8 sps:$4 sm:$0xff]  }
  0x7c   :  { %283 = vmatpush1.bf16.msra.mxu1 %v734_v9  ;;  %314 = vmatprep.mubr.bf16.mxu1 %v989_v7  ;;  %v785_v47 = vld [vmem:[#allocation11 + $0xe0] ss:$8 sps:$4 sm:$0xff]   ;;  %v786_v48 = vld [vmem:[#allocation11 + $0xf4] ss:$8 sps:$4 sm:$0xff]   ;;  %v788_v49 = vld [vmem:[#allocation11 + $0xf0] ss:$8 sps:$4 sm:$0xff]  }
  0x7d   :  { %284 = vmatprep.subr.bf16.mxu1 %v740_v11  ;;  %549 = vmatprep.subr.bf16.mxu0 %v750_v19  ;;  %v328_v51 = vshrl.u32 %v327_v50, 7  ;;  %v325_v53 = vld [vmem:[%s1203_s5] sm:$0x3]  ;;  %s990_s27 = smov [#allocation13]   ;;  %s991_s3 = smov [#allocation14]  }
  0x7e   :  { %v691_v11 = vld [vmem:[%s1205_s7] ss:$0 sm:$0xff]  ;;  %s612_s28 = sshll.u32 %s990_s27, 4  ;;  %s624_s12 = sshll.u32 %s991_s3, 4  ;;  %s613_s28 = int_to_ptr.vmem [resolvable:$true] %s612_s28  ;;  %s1161_s12 = int_to_ptr.vmem [resolvable:$true] %s624_s12 }
  0x7f   :  { %550 = vmatpush1.bf16.msra.mxu0 %v752_v20  ;;  %v329_v52 = vsub.s32 0, %v328_v51  ;;  %v333_v54 = vsub.s32 1, %v328_v51  ;;  %s921_s29 = scalar_lea.vmem %s613_s28, 128  ;;  %p926_p7 = scmp.lt.s32.totalorder %s613_s28, %s613_s28 }
  0x80   :  { %285 = vmatpush1.bf16.msra.mxu1 %v738_v12  ;;  %551 = vmatprep.subr.bf16.mxu0 %v753_v21  ;;  %p922_p6 = scmp.ne.s32.totalorder %s613_s28, %s921_s29  ;;  %p927_p8 = scmp.lt.s32.totalorder %s921_s29, %s921_s29 }
  0x81   :  { %v330_v55 = vrot.slane %v325_v53, %v329_v52  ;;  %v334_v56 = vrot.slane %v325_v53, %v333_v54 }
  0x82   :  { %p928_p9 = por %p927_p8, %p926_p7 }
  0x83   :  { %552 = vmatpush1.bf16.msra.mxu0 %v755_v22 }
  0x84   :  { %553 = vmatprep.subr.bf16.mxu0 %v756_v23  ;;  %p929_p10 = pnand %p928_p9, %p922_p6 }
  0x87   :  { %554 = vmatpush1.bf16.msra.mxu0 %v758_v24 }
  0x88   :  { %555 = vmatprep.subr.bf16.mxu0 %v759_v25 }
  0x8b   :  { %556 = vmatpush1.bf16.msra.mxu0 %v761_v26 }
  0x8c   :  { %557 = vmatprep.subr.bf16.mxu0 %v762_v27 }
  0x8f   :  { %558 = vmatpush1.bf16.msra.mxu0 %v764_v28 }
  0x90   :  { %559 = vmatprep.subr.bf16.mxu0 %v765_v29 }
  0x93   :  { %560 = vmatpush1.bf16.msra.mxu0 %v767_v30 }
  0x94   :  { %561 = vmatprep.subr.bf16.mxu0 %v768_v31 }
  0x97   :  { %562 = vmatpush1.bf16.msra.mxu0 %v770_v32 }
  0x98   :  { %563 = vmatprep.subr.bf16.mxu0 %v771_v33 }
  0x9b   :  { %564 = vmatpush1.bf16.msra.mxu0 %v773_v34 }
  0x9c   :  { %565 = vmatprep.subr.bf16.mxu0 %v774_v35 }
  0x9f   :  { %566 = vmatpush1.bf16.msra.mxu0 %v776_v36 }
  0xa0   :  { %567 = vmatprep.subr.bf16.mxu0 %v777_v37 }
  0xa3   :  { %568 = vmatpush1.bf16.msra.mxu0 %v779_v38 }
  0xa4   :  { %569 = vmatprep.subr.bf16.mxu0 %v780_v44 }
  0xa7   :  { %570 = vmatpush1.bf16.msra.mxu0 %v782_v45 }
  0xa8   :  { %571 = vmatprep.subr.bf16.mxu0 %v783_v46 }
  0xab   :  { %572 = vmatpush1.bf16.msra.mxu0 %v785_v47 }
  0xac   :  { %573 = vmatprep.subr.bf16.mxu0 %v786_v48 }
  0xaf   :  { %574 = vmatpush1.bf16.msra.mxu0 %v788_v49 }
 0x146   :  { %v169_v39 = vpop.f32.mrb[0].mxu1 }
 0x147   :  { %v705_v40 = vpop.f32.mrb[1].mxu1 }
 0x148   :  { %v172_v41 = vpop.f32.mrb[2].mxu1 }
 0x149   :  { %v176_v42 = vpack.c.bf16 %v172_v41, %v169_v39  ;;  %v706_v43 = vpop.f32.mrb[3].mxu1 }
 0x14b   :  { %656 = vmatmul.mubr.msk.bf16.vlgmr.msra.gmra.mrb[4].mxu1 %vm212_vm2, %v176_v42 }
 0x21e   :  { %v316_v57 = vpop.f32.mrb[4].mxu1 }
 0x21f   :  { %v337_v58 = vadd.f32 %v330_v55, %v316_v57  ;;  %v318_v59 = vpop.f32.mrb[5].mxu1 }
 0x220   :  { %v338_v60 = vadd.f32 %v334_v56, %v318_v59  ;;  %v320_v61 = vpop.f32.mrb[6].mxu1 }
 0x221   :  { %v341_v62 = vmul.f32 0.01, %v337_v58  ;;  %v339_v63 = vadd.f32 %v330_v55, %v320_v61  ;;  %v322_v0 = vpop.f32.mrb[7].mxu1 }
 0x222   :  { %v342_v1 = vmul.f32 0.01, %v338_v60  ;;  %v340_v2 = vadd.f32 %v334_v56, %v322_v0 }
 0x223   :  { %v343_v3 = vmul.f32 0.01, %v339_v63  ;;  %v345_v5 = vmax.f32 %v337_v58, %v341_v62 }
 0x224   :  { %v344_v4 = vmul.f32 0.01, %v340_v2  ;;  %v346_v7 = vmax.f32 %v338_v60, %v342_v1 }
 0x225   :  { %v347_v6 = vmax.f32 %v339_v63, %v343_v3 }
 0x226   :  { %v348_v8 = vmax.f32 %v340_v2, %v344_v4 }
 0x227   :  { %v349_v9 = vpack.c.bf16 %v347_v6, %v345_v5 }
 0x228   :  { %v350_v10 = vpack.c.bf16 %v348_v8, %v346_v7 }
 0x22a   :  { %575 = vmatprep.mubr.bf16.mxu0 %v350_v10 }
 0x22b   :  { %576 = vmatmul.mubr.bf16.vlgmr.msra.gmra.mrb[0].mxu0 %v349_v9 }
 0x2fe   :  { %v577_v12 = vpop.f32.mrb[0].mxu0 }
 0x2ff   :  { %v579_v13 = vpop.f32.mrb[1].mxu0 }
 0x300   :  { %v603_v14 = vadd.f32 %v691_v11, %v579_v13  ;;  %v581_v15 = vpop.f32.mrb[2].mxu0 }
 0x301   :  { %v697_v16 = vpack.c.bf16 %v581_v15, %v577_v12  ;;  %v583_v17 = vpop.f32.mrb[3].mxu0 }
 0x302   :  { %605 = vst [vmem:[#allocation14] sm:$0xff] %v603_v14  ;;  %v604_v18 = vadd.f32 %v691_v11, %v583_v17 }
 0x303   :  { %698 = vst [vmem:[#allocation13] sm:$0xff] %v697_v16  }
 0x304   :  { %606 = vst [vmem:[#allocation14 + $0x8] sm:$0xff] %v604_v18 }
 0x305   :  { %932 = shalt.err (!%p929_p10)
}
 0x306   :  { %s933_s11 = scalar_lea.hbm %s1206_s8, 128 }
 0x307   :  { %p934_p11 = scmp.ne.s32.totalorder %s1206_s8, %s933_s11  ;;  %p937_p12 = scmp.lt.u32.totalorder %s933_s11, %s1206_s8 }
 0x309   :  { %p939_p13 = pnand %p937_p12, %p934_p11 }
 0x30b   :  { %942 = shalt.err (!%p939_p13)
}
 0x30c   :  { %618 = dma.vmem_to_hbm [thread:$0]  %s613_s28, 128, %s1206_s8, [#allocation4], %s979_s21, %s979_s21, %s980_s22  }
 0x30d   :  { %s943_s18 = scalar_lea.vmem %s1161_s12, 256  ;;  %p948_p1 = scmp.lt.s32.totalorder %s1161_s12, %s1161_s12 }
 0x30e   :  { %p944_p0 = scmp.ne.s32.totalorder %s1161_s12, %s943_s18  ;;  %p949_p2 = scmp.lt.s32.totalorder %s943_s18, %s943_s18 }
 0x310   :  { %p950_p3 = por %p949_p2, %p948_p1 }
 0x312   :  { %p951_p4 = pnand %p950_p3, %p944_p0 }
 0x314   :  { %954 = shalt.err (!%p951_p4)
}
 0x315   :  { %s955_s17 = scalar_lea.hbm %s1207_s9, 256 }
 0x316   :  { %p956_p5 = scmp.ne.s32.totalorder %s1207_s9, %s955_s17  ;;  %p959_p6 = scmp.lt.u32.totalorder %s955_s17, %s1207_s9 }
 0x318   :  { %p961_p7 = pnand %p959_p6, %p956_p5 }
 0x31a   :  { %964 = shalt.err (!%p961_p7)
}
 0x31b   :  { %630 = dma.vmem_to_hbm [thread:$0]  %s1161_s12, 256, %s1207_s9, [#allocation15], %s981_s1, %s981_s1, %s982_s10  }
 0x31c   :  { %973 = dma.done.wait [#allocation4], 128  }
 0x31d   :  { %974 = vsyncadd [#allocation4], 4294967168 }
 0x31e   :  { %975 = dma.done.wait [#allocation15], 256  }
 0x31f   :  { %976 = vsyncadd [#allocation15], 4294967040 }
 0x320   :  { %637 = vsyncpa [#allocation3], 1 }
 0x321   :  { %638 = vsyncpa [#allocation6], 1 }
 0x322   :  { %639 = vsyncpa [#allocation9], 1 }
 0x323   :  { %640 = vsyncpa [#allocation12], 1 }
 0x324   :  { %641 = vsyncpa [#allocation4], 1 }
 0x325   :  { %642 = vsyncpa [#allocation15], 1 }

</bundles_post_ra>
